<compile_context>
chip_gen: v7x
topology: tpu7x:2x2x1
jax: 0.10.0
libtpu: 0.0.40
codegen_flags: <defaults>
</compile_context>

<pallas_src>
from functools import partial
from typing import NamedTuple, Tuple

import jax
import jax.numpy as jnp
from jax.experimental import pallas as pl
from jax.experimental.pallas import tpu as pltpu


class BlobConfig(NamedTuple):
    side: str
    start_y: float
    start_x: float
    start_s: float
    a_range: Tuple[float, float]


# Per-blob kernel parameters: [y, x, A, B, C] (quadratic-form coefficients,
# -0.5 already folded in).
NPARAM = 5


# ----------------------------------------------------------------------------
# Pallas kernel: splat all blobs for a (B_TILE, P_TILE) lane-dense pixel block
# ----------------------------------------------------------------------------
def _splat_kernel(params_ref, ys_ref, xs_ref, out_ref, *, num_blobs):
    # params_ref: VMEM block (b_tile, num_blobs * NPARAM) float32
    # ys_ref/xs_ref: VMEM blocks (1, p_tile) float32 (pixel-center coords)
    # out_ref:    VMEM block (b_tile, p_tile) float32 (lane-dense flat image)
    ys = ys_ref[...]            # (1, p_tile) - sublane broadcast against batch
    xs = xs_ref[...]

    acc = None
    # num_blobs is a small compile-time constant (2 here) -> static unroll is
    # fine; switch to lax.fori_loop with partial unroll if it grows past ~8-16.
    for i in range(num_blobs):
        base = i * NPARAM
        y = params_ref[:, base + 0:base + 1]    # (b_tile, 1), lane-broadcast
        x = params_ref[:, base + 1:base + 2]
        A = params_ref[:, base + 2:base + 3]
        B = params_ref[:, base + 3:base + 4]
        C = params_ref[:, base + 4:base + 5]

        dy = ys - y                              # (b_tile, p_tile)
        dx = xs - x
        e = dx * (A * dx + B * dy) + C * (dy * dy)
        img = jnp.exp(e)                         # inferred splat_coord: Gaussian
        # acc*img + img == (acc + 1)*img ; first blob: acc starts at 0 -> img
        acc = img if acc is None else (acc + 1.0) * img

    out_ref[...] = acc


def _choose_tiles(batch, pix):
    """Pick (b_tile, p_tile, batch_pad, pix_pad) with legal, lane-dense tiles."""
    # Batch tile: multiple of 8, capped at 64; don't pad a tiny batch up to a
    # huge tile.
    b_tile = min(64, max(8, ((batch + 7) // 8) * 8))
    batch_pad = ((batch + b_tile - 1) // b_tile) * b_tile

    # Pixel tile: multiple of 128; keep each output block <= ~2 MiB so we stay
    # comfortably under v7x's 32 MiB scoped-VMEM default with double-buffering.
    cap = max(128, ((2 << 20) // (b_tile * 4)) // 128 * 128)
    if pix <= cap:
        p_tile = ((pix + 127) // 128) * 128
    else:
        p_tile = cap
    pix_pad = ((pix + p_tile - 1) // p_tile) * p_tile
    return b_tile, p_tile, batch_pad, pix_pad


def _splat_pallas(params_flat, batch, num_blobs, target_size):
    T = target_size
    PIX = T * T
    NP = num_blobs * NPARAM
    b_tile, p_tile, batch_pad, pix_pad = _choose_tiles(batch, PIX)

    if batch_pad != batch:
        params_flat = jnp.pad(params_flat, ((0, batch_pad - batch), (0, 0)))

    # Pixel-center coordinates of the flattened (row-major) T x T grid,
    # precomputed once on host-side JAX (removes per-tile integer div/mod).
    coords = (jnp.arange(T, dtype=jnp.float32) + 0.5) / T
    yy, xx = jnp.meshgrid(coords, coords, indexing="ij")
    ys_flat = yy.reshape(1, PIX)
    xs_flat = xx.reshape(1, PIX)
    if pix_pad != PIX:
        ys_flat = jnp.pad(ys_flat, ((0, 0), (0, pix_pad - PIX)))
        xs_flat = jnp.pad(xs_flat, ((0, 0), (0, pix_pad - PIX)))

    grid = (batch_pad // b_tile, pix_pad // p_tile)

    cost = pl.CostEstimate(
        flops=batch_pad * pix_pad * num_blobs * 10,
        transcendentals=batch_pad * pix_pad * num_blobs,
        bytes_accessed=4 * (batch_pad * (pix_pad + NP) + 2 * pix_pad),
    )

    out_flat = pl.pallas_call(
        partial(_splat_kernel, num_blobs=num_blobs),
        out_shape=jax.ShapeDtypeStruct((batch_pad, pix_pad), jnp.float32),
        grid=grid,
        in_specs=[
            pl.BlockSpec((b_tile, NP), lambda b, p: (b, 0)),
            pl.BlockSpec((1, p_tile), lambda b, p: (0, p)),
            pl.BlockSpec((1, p_tile), lambda b, p: (0, p)),
        ],
        out_specs=pl.BlockSpec((b_tile, p_tile), lambda b, p: (b, p)),
        compiler_params=pltpu.CompilerParams(
            dimension_semantics=("parallel", "parallel")),
        cost_estimate=cost,
    )(params_flat, ys_flat, xs_flat)

    return out_flat[:batch, :PIX].reshape(batch, T, T)


# ----------------------------------------------------------------------------
# Glue (plain JAX): position encoder MLP + blob_data -> quadratic coefficients
# ----------------------------------------------------------------------------
def _position_encoder(enc_params, x):
    W1, b1, W2, b2 = enc_params
    h = jnp.maximum(x @ W1 + b1, 0.0)
    return h @ W2 + b2


def _raw_blob_data(positions, cfg, enc, blobs_scale_factor):
    if cfg.side == "right":
        curr_pos = positions[:, :3]
    else:
        curr_pos = positions[:, 3:]
    bd = _position_encoder(enc, curr_pos * 100.0)                 # (batch, 5)
    y = jax.nn.sigmoid(bd[:, 0]) + cfg.start_y
    x = jax.nn.sigmoid(bd[:, 1]) + cfg.start_x
    s = (bd[:, 2] + cfg.start_s) * blobs_scale_factor
    a = cfg.a_range[0] + jax.nn.sigmoid(bd[:, 3]) * (cfg.a_range[1] - cfg.a_range[0])
    th = jax.nn.sigmoid(bd[:, 4]) * jnp.pi
    # numerical floor so the inferred Gaussian never divides by ~0
    s_sq = jnp.maximum(s * s, 1e-8)
    inv_u = a / s_sq
    inv_v = 1.0 / (a * s_sq)
    return y, x, inv_u, inv_v, th


def _compute_blob_params(positions, blob_configs, encoders, blobs_scale_factor):
    """Returns (batch, num_blobs, 5) with rows [y, x, A, B, C]."""
    rows = []
    for cfg, enc in zip(blob_configs, encoders):
        y, x, inv_u, inv_v, th = _raw_blob_data(positions, cfg, enc, blobs_scale_factor)
        c = jnp.cos(th)
        sn = jnp.sin(th)
        A = -0.5 * (c * c * inv_u + sn * sn * inv_v)
        B = -(c * sn) * (inv_u - inv_v)
        C = -0.5 * (sn * sn * inv_u + c * c * inv_v)
        rows.append(jnp.stack([y, x, A, B, C], axis=-1))
    return jnp.stack(rows, axis=1)                                # (batch, nb, 5)


def blob_splatter_forward(positions, target_size, blobs_scale_factor,
                          blob_configs, encoders):
    batch = positions.shape[0]
    num_blobs = len(blob_configs)
    params = _compute_blob_params(positions, blob_configs, encoders,
                                  blobs_scale_factor)
    params_flat = params.reshape(batch, num_blobs * NPARAM).astype(jnp.float32)
    return _splat_pallas(params_flat, batch, num_blobs, target_size)


# ----------------------------------------------------------------------------
# Pure-JAX reference (original rotate-u/v formulation) to verify the kernel
# ----------------------------------------------------------------------------
def _reference_forward(positions, target_size, blobs_scale_factor,
                       blob_configs, encoders):
    T = target_size
    coords = (jnp.arange(T, dtype=jnp.float32) + 0.5) / T
    yy, xx = jnp.meshgrid(coords, coords, indexing="ij")
    batch = positions.shape[0]
    acc = jnp.zeros((batch, T, T), jnp.float32)
    for cfg, enc in zip(blob_configs, encoders):
        y, x, inv_u, inv_v, th = _raw_blob_data(positions, cfg, enc, blobs_scale_factor)
        c = jnp.cos(th)[:, None, None]
        sn = jnp.sin(th)[:, None, None]
        dy = yy[None] - y[:, None, None]
        dx = xx[None] - x[:, None, None]
        u = c * dx + sn * dy
        v = -sn * dx + c * dy
        d = u * u * inv_u[:, None, None] + v * v * inv_v[:, None, None]
        img = jnp.exp(-0.5 * d)
        acc = acc * img + img
    return acc


def init_position_encoders(key, num, in_dim=3, hidden=32, out_dim=5):
    encoders = []
    for _ in range(num):
        key, k1, k2 = jax.random.split(key, 3)
        W1 = jax.random.normal(k1, (in_dim, hidden), jnp.float32) * 0.02
        b1 = jnp.zeros((hidden,), jnp.float32)
        W2 = jax.random.normal(k2, (hidden, out_dim), jnp.float32) * 0.02
        b2 = jnp.zeros((out_dim,), jnp.float32)
        encoders.append((W1, b1, W2, b2))
    return encoders


if __name__ == "__main__":
    key = jax.random.PRNGKey(0)
    k_pos, k_enc = jax.random.split(key)

    batch = 2
    target_size = 16
    blobs_scale_factor = 1.0

    positions = jax.random.normal(k_pos, (batch, 6), dtype=jnp.float32) * 0.01

    blob_configs = [
        BlobConfig(side="right", start_y=0.2, start_x=0.3, start_s=0.5, a_range=(0.5, 2.0)),
        BlobConfig(side="left", start_y=0.6, start_x=0.5, start_s=0.4, a_range=(0.8, 1.5)),
    ]
    encoders = init_position_encoders(k_enc, len(blob_configs))

    out = blob_splatter_forward(positions, target_size, blobs_scale_factor,
                                blob_configs, encoders)
    out = jax.block_until_ready(out)

    # Verify against the pure-JAX reference of the full splat/combine path.
    ref = _reference_forward(positions, target_size, blobs_scale_factor,
                             blob_configs, encoders)
    assert out.shape == (batch, target_size, target_size)
    assert out.dtype == jnp.float32
    assert bool(jnp.allclose(out, ref, rtol=1e-3, atol=1e-3)), "kernel mismatch vs reference"

    print("KERNEL_OK")
</pallas_src>

<mosaic_0001>
module attributes {stable_mosaic.version = 11 : i64} {
  func.func @_splat_kernel(%arg0: i32, %arg1: i32, %arg2: memref<8x10xf32, #tpu.memory_space<vmem>>, %arg3: memref<1x256xf32, #tpu.memory_space<vmem>>, %arg4: memref<1x256xf32, #tpu.memory_space<vmem>>, %arg5: memref<8x256xf32, #tpu.memory_space<vmem>>) attributes {dimension_semantics = [#tpu.dimension_semantics<parallel>, #tpu.dimension_semantics<parallel>], iteration_bounds = array<i64: 1, 1>, scalar_prefetch = 0 : i64, scratch_operands = 0 : i64, tpu.core_type = #tpu.core_type<tc>, window_params = [{transform_indices = @transform_0, window_bounds = array<i64: 8, 10>}, {transform_indices = @transform_1, window_bounds = array<i64: 1, 256>}, {transform_indices = @transform_2, window_bounds = array<i64: 1, 256>}, {transform_indices = @transform_3, window_bounds = array<i64: 8, 256>}]} {
    %c0 = arith.constant 0 : index
    %c0_0 = arith.constant 0 : index
    %0 = vector.load %arg3[%c0, %c0_0] : memref<1x256xf32, #tpu.memory_space<vmem>>, vector<1x256xf32>
    %c0_1 = arith.constant 0 : index
    %c0_2 = arith.constant 0 : index
    %1 = vector.load %arg4[%c0_1, %c0_2] : memref<1x256xf32, #tpu.memory_space<vmem>>, vector<1x256xf32>
    %c0_3 = arith.constant 0 : index
    %c0_4 = arith.constant 0 : index
    %2 = vector.load %arg2[%c0_3, %c0_4] : memref<8x10xf32, #tpu.memory_space<vmem>>, vector<8x1xf32>
    %c0_5 = arith.constant 0 : index
    %c1 = arith.constant 1 : index
    %3 = vector.load %arg2[%c0_5, %c1] : memref<8x10xf32, #tpu.memory_space<vmem>>, vector<8x1xf32>
    %c0_6 = arith.constant 0 : index
    %c2 = arith.constant 2 : index
    %4 = vector.load %arg2[%c0_6, %c2] : memref<8x10xf32, #tpu.memory_space<vmem>>, vector<8x1xf32>
    %c0_7 = arith.constant 0 : index
    %c3 = arith.constant 3 : index
    %5 = vector.load %arg2[%c0_7, %c3] : memref<8x10xf32, #tpu.memory_space<vmem>>, vector<8x1xf32>
    %c0_8 = arith.constant 0 : index
    %c4 = arith.constant 4 : index
    %6 = vector.load %arg2[%c0_8, %c4] : memref<8x10xf32, #tpu.memory_space<vmem>>, vector<8x1xf32>
    %7 = vector.broadcast %0 : vector<1x256xf32> to vector<8x256xf32>
    %8 = vector.broadcast %2 : vector<8x1xf32> to vector<8x256xf32>
    %9 = arith.subf %7, %8 : vector<8x256xf32>
    %10 = vector.broadcast %1 : vector<1x256xf32> to vector<8x256xf32>
    %11 = vector.broadcast %3 : vector<8x1xf32> to vector<8x256xf32>
    %12 = arith.subf %10, %11 : vector<8x256xf32>
    %13 = vector.broadcast %4 : vector<8x1xf32> to vector<8x256xf32>
    %14 = arith.mulf %13, %12 : vector<8x256xf32>
    %15 = vector.broadcast %5 : vector<8x1xf32> to vector<8x256xf32>
    %16 = arith.mulf %15, %9 : vector<8x256xf32>
    %17 = arith.addf %14, %16 : vector<8x256xf32>
    %18 = arith.mulf %12, %17 : vector<8x256xf32>
    %19 = arith.mulf %9, %9 : vector<8x256xf32>
    %20 = vector.broadcast %6 : vector<8x1xf32> to vector<8x256xf32>
    %21 = arith.mulf %20, %19 : vector<8x256xf32>
    %22 = arith.addf %18, %21 : vector<8x256xf32>
    %23 = math.exp %22 : vector<8x256xf32>
    %c0_9 = arith.constant 0 : index
    %c5 = arith.constant 5 : index
    %24 = vector.load %arg2[%c0_9, %c5] : memref<8x10xf32, #tpu.memory_space<vmem>>, vector<8x1xf32>
    %c0_10 = arith.constant 0 : index
    %c6 = arith.constant 6 : index
    %25 = vector.load %arg2[%c0_10, %c6] : memref<8x10xf32, #tpu.memory_space<vmem>>, vector<8x1xf32>
    %c0_11 = arith.constant 0 : index
    %c7 = arith.constant 7 : index
    %26 = vector.load %arg2[%c0_11, %c7] : memref<8x10xf32, #tpu.memory_space<vmem>>, vector<8x1xf32>
    %c0_12 = arith.constant 0 : index
    %c8 = arith.constant 8 : index
    %27 = vector.load %arg2[%c0_12, %c8] : memref<8x10xf32, #tpu.memory_space<vmem>>, vector<8x1xf32>
    %c0_13 = arith.constant 0 : index
    %c9 = arith.constant 9 : index
    %28 = vector.load %arg2[%c0_13, %c9] : memref<8x10xf32, #tpu.memory_space<vmem>>, vector<8x1xf32>
    %29 = vector.broadcast %0 : vector<1x256xf32> to vector<8x256xf32>
    %30 = vector.broadcast %24 : vector<8x1xf32> to vector<8x256xf32>
    %31 = arith.subf %29, %30 : vector<8x256xf32>
    %32 = vector.broadcast %1 : vector<1x256xf32> to vector<8x256xf32>
    %33 = vector.broadcast %25 : vector<8x1xf32> to vector<8x256xf32>
    %34 = arith.subf %32, %33 : vector<8x256xf32>
    %35 = vector.broadcast %26 : vector<8x1xf32> to vector<8x256xf32>
    %36 = arith.mulf %35, %34 : vector<8x256xf32>
    %37 = vector.broadcast %27 : vector<8x1xf32> to vector<8x256xf32>
    %38 = arith.mulf %37, %31 : vector<8x256xf32>
    %39 = arith.addf %36, %38 : vector<8x256xf32>
    %40 = arith.mulf %34, %39 : vector<8x256xf32>
    %41 = arith.mulf %31, %31 : vector<8x256xf32>
    %42 = vector.broadcast %28 : vector<8x1xf32> to vector<8x256xf32>
    %43 = arith.mulf %42, %41 : vector<8x256xf32>
    %44 = arith.addf %40, %43 : vector<8x256xf32>
    %45 = math.exp %44 : vector<8x256xf32>
    %cst = arith.constant 1.000000e+00 : f32
    %46 = vector.broadcast %cst : f32 to vector<8x256xf32>
    %47 = arith.addf %23, %46 : vector<8x256xf32>
    %48 = arith.mulf %47, %45 : vector<8x256xf32>
    %c0_14 = arith.constant 0 : index
    %c0_15 = arith.constant 0 : index
    %49 = vector.load %arg5[%c0_14, %c0_15] : memref<8x256xf32, #tpu.memory_space<vmem>>, vector<8x256xf32>
    tpu.vector_store %arg5[%c0_14, %c0_15], %48 {strides = array<i32>} : memref<8x256xf32, #tpu.memory_space<vmem>>, vector<8x256xf32>,
    return
  }
  func.func @transform_0(%arg0: i32, %arg1: i32) -> (i32, i32) {
    %c0_i32 = arith.constant 0 : i32
    %c0_i32_0 = arith.constant 0 : i32
    return %arg0, %c0_i32 : i32, i32
  }
  func.func @transform_1(%arg0: i32, %arg1: i32) -> (i32, i32) {
    %c0_i32 = arith.constant 0 : i32
    %c0_i32_0 = arith.constant 0 : i32
    return %c0_i32, %arg1 : i32, i32
  }
  func.func @transform_2(%arg0: i32, %arg1: i32) -> (i32, i32) {
    %c0_i32 = arith.constant 0 : i32
    %c0_i32_0 = arith.constant 0 : i32
    return %c0_i32, %arg1 : i32, i32
  }
  func.func @transform_3(%arg0: i32, %arg1: i32) -> (i32, i32) {
    %c0_i32 = arith.constant 0 : i32
    return %arg0, %arg1 : i32, i32
  }
}

</mosaic_0001>

<bundles_post_ra>
// kernel: tpu_custom_call.1
= control target key start
LH: loop header
LB: loop body
LE: loop exit
PB: predicated region body
PF: predicated region fallthrough
CT: control target
= control target key end

     0   :  { %8 = vsyncpa [#allocation3], 0  ;;  %s299_s0 = inlined_call_operand.hbm [shape: f32[8,10], index: 0, kind: input, shape index: {}]   ;;  %s300_s1 = inlined_call_operand.vmem [shape: f32[1,256], index: 1, kind: input, shape index: {}]   ;;  %s301_s2 = inlined_call_operand.vmem [shape: f32[1,256], index: 2, kind: input, shape index: {}]   ;;  %s302_s3 = inlined_call_operand.hbm [shape: f32[8,256], index: 3, kind: output, shape index: {}]  }
   0x1   :  { %9 = vsyncpa [#allocation4], 0  ;;  %s237_s12 = smov [#allocation2]   ;;  %s189_s16 = scalar_lea.hbm %s299_s0, 128 }
   0x2   :  { %s16_s13 = sshll.u32 %s237_s12, 4  ;;  %p190_p0 = scmp.ne.s32.totalorder %s299_s0, %s189_s16  ;;  %s17_s13 = int_to_ptr.vmem [resolvable:$true] %s16_s13 }
   0x3   :  { %p193_p1 = scmp.lt.u32.totalorder %s189_s16, %s299_s0 }
   0x5   :  { %p195_p2 = pnand %p193_p1, %p190_p0 }
   0x7   :  { %198 = shalt.err (!%p195_p2)
}
   0x8   :  { %s199_s21 = scalar_lea.vmem %s17_s13, 128  ;;  %p204_p4 = scmp.lt.s32.totalorder %s17_s13, %s17_s13 }
   0x9   :  { %p200_p3 = scmp.ne.s32.totalorder %s17_s13, %s199_s21  ;;  %p205_p5 = scmp.lt.s32.totalorder %s199_s21, %s199_s21 }
   0xb   :  { %p206_p6 = por %p205_p5, %p204_p4 }
   0xd   :  { %p207_p7 = pnand %p206_p6, %p200_p3 }
   0xf   :  { %210 = shalt.err (!%p207_p7)
}
  0x10   :  { %19 = dma.hbm_to_vmem [thread:$0]  %s299_s0, 128, %s17_s13, [#allocation3]  }
  0x11   :  { %233 = dma.done.wait [#allocation3], 128  }
  0x12   :  { %234 = vsyncadd [#allocation3], 4294967168  ;;  %v238_v0 = vmov 2   ;;  %v239_v1 = vmov 0   ;;  %v29_v2 = vld [vmem:[#allocation2] sm:$0xff]  ;;  %v240_v3 = vmov 3   ;;  %v31_v11 = vlaneseq }
  0x13   :  { %172 = vset.pattern.permute.xlu1 %v238_v0  ;;  %170 = vset.pattern.permute.xlu0 %v239_v1  ;;  %v241_v4 = vmov 1   ;;  %v242_v5 = vmov 5   ;;  %v243_v6 = vmov 6   ;;  %v244_v7 = vmov 7   ;;  %v28_v13 = vld [vmem:[%s301_s2] sm:$0x3] }
  0x14   :  { %66 = vperm.xlu1 %172, %v29_v2   ;;  %43 = vperm.xlu0 %170, %v29_v2   ;;  %v245_v8 = vmov 4   ;;  %v246_v9 = vmov 8   ;;  %v247_v10 = vmov 9   ;;  %v32_v12 = vshrl.u32 %v31_v11, 7  ;;  %v27_v18 = vld [vmem:[%s300_s1] sm:$0x3] }
  0x15   :  { %s248_s1 = smov [#allocation5]  }
  0x16   :  { %v33_v15 = vsub.s32 0, %v32_v12  ;;  %v37_v17 = vsub.s32 1, %v32_v12  ;;  %s149_s2 = sshll.u32 %s248_s1, 4  ;;  %s150_s2 = int_to_ptr.vmem [resolvable:$true] %s149_s2 }
  0x17   :  { %s211_s27 = scalar_lea.vmem %s150_s2, 256  ;;  %p216_p9 = scmp.lt.s32.totalorder %s150_s2, %s150_s2 }
  0x18   :  { %173 = vset.pattern.permute.xlu1 %v240_v3  ;;  %171 = vset.pattern.permute.xlu0 %v241_v4  ;;  %v52_v19 = vrot.slane %v28_v13, %v33_v15  ;;  %v56_v20 = vrot.slane %v28_v13, %v37_v17  ;;  %v34_v21 = vrot.slane %v27_v18, %v33_v15  ;;  %p212_p8 = scmp.ne.s32.totalorder %s150_s2, %s211_s27  ;;  %p217_p10 = scmp.lt.s32.totalorder %s211_s27, %s211_s27 }
  0x19   :  { %72 = vperm.xlu1 %173, %v29_v2   ;;  %60 = vperm.xlu0 %171, %v29_v2   ;;  %v38_v22 = vrot.slane %v27_v18, %v37_v17 }
  0x1a   :  { %p218_p11 = por %p217_p10, %p216_p9 }
  0x1c   :  { %p219_p12 = pnand %p218_p11, %p212_p8 }
  0x1d   :  { %174 = vset.pattern.permute.xlu1 %v242_v5  ;;  %175 = vset.pattern.permute.xlu0 %v243_v6 }
  0x1e   :  { %96 = vperm.xlu1 %174, %v29_v2   ;;  %102 = vperm.xlu0 %175, %v29_v2  }
  0x22   :  { %176 = vset.pattern.permute.xlu1 %v244_v7  ;;  %178 = vset.pattern.permute.xlu0 %v245_v8 }
  0x23   :  { %108 = vperm.xlu1 %176, %v29_v2   ;;  %84 = vperm.xlu0 %178, %v29_v2  }
  0x27   :  { %177 = vset.pattern.permute.xlu1 %v246_v9  ;;  %180 = vset.pattern.permute.xlu0 %v247_v10 }
  0x28   :  { %114 = vperm.xlu1 %177, %v29_v2  }
  0x2c   :  { %179 = vset.pattern.permute.xlu1 %v247_v10 }
  0x2d   :  { %126 = vperm.xlu1 %179, %v29_v2  }
  0x93   :  { %v67_v14 = vpop.permute.xlu1 %66  ;;  %v44_v16 = vpop.permute.xlu0 %43 }
  0x94   :  { %v46_v27 = vsub.f32 %v34_v21, %v44_v16  ;;  %v47_v28 = vsub.f32 %v38_v22, %v44_v16 }
  0x96   :  { %v81_v36 = vmul.f32 %v46_v27, %v46_v27  ;;  %v82_v40 = vmul.f32 %v47_v28, %v47_v28 }
  0x98   :  { %v73_v23 = vpop.permute.xlu1 %72  ;;  %v61_v24 = vpop.permute.xlu0 %60 }
  0x99   :  { %v63_v25 = vsub.f32 %v52_v19, %v61_v24  ;;  %v64_v26 = vsub.f32 %v56_v20, %v61_v24  ;;  %v75_v33 = vmul.f32 %v73_v23, %v46_v27  ;;  %v76_v34 = vmul.f32 %v73_v23, %v47_v28 }
  0x9b   :  { %v69_v29 = vmul.f32 %v67_v14, %v63_v25  ;;  %v70_v32 = vmul.f32 %v67_v14, %v64_v26 }
  0x9d   :  { %v97_v30 = vpop.permute.xlu1 %96  ;;  %v103_v31 = vpop.permute.xlu0 %102  ;;  %v77_v35 = vadd.f32 %v75_v33, %v69_v29  ;;  %v78_v37 = vadd.f32 %v76_v34, %v70_v32 }
  0x9e   :  { %v105_v41 = vsub.f32 %v52_v19, %v103_v31  ;;  %v106_v43 = vsub.f32 %v56_v20, %v103_v31  ;;  %v99_v47 = vsub.f32 %v34_v21, %v97_v30  ;;  %v100_v48 = vsub.f32 %v38_v22, %v97_v30 }
  0x9f   :  { %v79_v45 = vmul.f32 %v77_v35, %v63_v25  ;;  %v80_v46 = vmul.f32 %v78_v37, %v64_v26 }
  0xa0   :  { %v123_v59 = vmul.f32 %v99_v47, %v99_v47  ;;  %v124_v60 = vmul.f32 %v100_v48, %v100_v48 }
  0xa2   :  { %v109_v38 = vpop.permute.xlu1 %108  ;;  %v85_v39 = vpop.permute.xlu0 %84 }
  0xa3   :  { %v87_v42 = vmul.f32 %v85_v39, %v81_v36  ;;  %v88_v44 = vmul.f32 %v85_v39, %v82_v40  ;;  %v111_v49 = vmul.f32 %v109_v38, %v105_v41  ;;  %v112_v52 = vmul.f32 %v109_v38, %v106_v43 }
  0xa5   :  { %v89_v50 = vadd.f32 %v87_v42, %v79_v45  ;;  %v90_v53 = vadd.f32 %v88_v44, %v80_v46 }
  0xa7   :  { %v115_v51 = vpop.permute.xlu1 %114  ;;  %v91_v58 = vmul.f32 1.442695, %v89_v50  ;;  %v93_v61 = vmul.f32 1.442695, %v90_v53 }
  0xa8   :  { %v117_v54 = vmul.f32 %v115_v51, %v99_v47  ;;  %v118_v55 = vmul.f32 %v115_v51, %v100_v48 }
  0xa9   :  { %181 = vpow2.f32 %v91_v58 }
  0xaa   :  { %v119_v56 = vadd.f32 %v117_v54, %v111_v49  ;;  %v120_v57 = vadd.f32 %v118_v55, %v112_v52  ;;  %183 = vpow2.f32 %v93_v61 }
  0xac   :  { %v127_v62 = vpop.permute.xlu1 %126  ;;  %v121_v63 = vmul.f32 %v119_v56, %v105_v41  ;;  %v122_v0 = vmul.f32 %v120_v57, %v106_v43 }
  0xad   :  { %v129_v1 = vmul.f32 %v127_v62, %v123_v59  ;;  %v130_v2 = vmul.f32 %v127_v62, %v124_v60 }
  0xaf   :  { %v131_v3 = vadd.f32 %v129_v1, %v121_v63  ;;  %v132_v4 = vadd.f32 %v130_v2, %v122_v0 }
  0xb1   :  { %v133_v5 = vmul.f32 1.442695, %v131_v3  ;;  %v135_v6 = vmul.f32 1.442695, %v132_v4 }
  0xb3   :  { %185 = vpow2.f32 %v133_v5  ;;  %v182_v7 = vpop.eup %181 }
  0xb4   :  { %187 = vpow2.f32 %v135_v6  ;;  %v184_v8 = vpop.eup %183  ;;  %v137_v9 = vadd.f32 1.0, %v182_v7 }
  0xb5   :  { %v138_v11 = vadd.f32 1.0, %v184_v8 }
  0xbd   :  { %v186_v10 = vpop.eup %185 }
  0xbe   :  { %v188_v12 = vpop.eup %187  ;;  %v139_v13 = vmul.f32 %v186_v10, %v137_v9 }
  0xbf   :  { %v140_v14 = vmul.f32 %v188_v12, %v138_v11 }
  0xc0   :  { %141 = vst [vmem:[#allocation5] sm:$0xff] %v139_v13 }
  0xc1   :  { %142 = vst [vmem:[#allocation5 + $0x8] sm:$0xff] %v140_v14 }
  0xc2   :  { %222 = shalt.err (!%p219_p12)
}
  0xc3   :  { %s223_s30 = scalar_lea.hbm %s302_s3, 256 }
  0xc4   :  { %p224_p13 = scmp.ne.s32.totalorder %s302_s3, %s223_s30  ;;  %p227_p0 = scmp.lt.u32.totalorder %s223_s30, %s302_s3 }
  0xc6   :  { %p229_p1 = pnand %p227_p0, %p224_p13 }
  0xc8   :  { %232 = shalt.err (!%p229_p1)
}
  0xc9   :  { %152 = dma.vmem_to_hbm [thread:$0]  %s150_s2, 256, %s302_s3, [#allocation4]  }
  0xca   :  { %235 = dma.done.wait [#allocation4], 256  }
  0xcb   :  { %236 = vsyncadd [#allocation4], 4294967040 }
  0xcc   :  { %156 = vsyncpa [#allocation3], 1 }
  0xcd   :  { %157 = vsyncpa [#allocation4], 1 }

</bundles_post_ra>
